<compile_context>
chip_gen: v7x
topology: tpu7x:2x2x1
jax: 0.10.0
libtpu: 0.0.40
codegen_flags: <defaults>
</compile_context>

<pallas_src>
import jax
import jax.numpy as jnp
from jax import lax
from jax.experimental import pallas as pl
from jax.experimental.pallas import tpu as pltpu


def _round_up(n, m):
    return ((n + m - 1) // m) * m


def _vmem_cost(bt, L, dw, dh_pad):
    """Rough per-step VMEM bytes: double-buffered bf16 input + f32 intermediates."""
    in_blk = bt * L * dw * 2                       # bf16 activation block
    interm = bt * L * (3 * dh_pad) * 4 + 3 * bt * L * dh_pad * 4
    out_blk = bt * dh_pad * 4
    return 2 * in_blk + interm + 2 * out_blk


def _pick_block_batch(B, L, dw, dh_pad, target=256, budget_bytes=24 << 20):
    """Largest batch block <= target that divides B, keeps sublane alignment,
    fits a conservative VMEM budget (v7x-safe), and leaves >= 2 grid steps when
    possible (so v7x's two TensorCores both get work)."""
    def feasible(bt):
        if B % bt:
            return False
        if bt != B and (bt % 8 != 0 or (bt * L) % 16 != 0):
            return False
        return _vmem_cost(bt, L, dw, dh_pad) <= budget_bytes

    cands = [bt for bt in range(1, min(B, target) + 1) if feasible(bt)]
    if not cands:
        return B                                   # tiny/odd batch: one full block
    multi = [bt for bt in cands if B // bt >= 2]
    return max(multi) if multi else max(cands)


def cnn_kernel(x_ref, wconv_ref, bconv_ref, wlin_ref, blin_ref, out_ref):
    # x_ref     : (Bt*L, dw)        bf16  scrambled activations (the .view bug applied)
    # wconv_ref : (dw, 3*dh_pad)    bf16  [W0 | W1 | W2], Wk[c, o] = conv_w[o, c, k]
    # bconv_ref : (1, dh_pad)       f32
    # wlin_ref  : (dh_pad, n_pad)   bf16
    # blin_ref  : (1, n_pad)        f32
    # out_ref   : (Bt, n_pad)       f32   lane-dense output slab
    BtL = x_ref.shape[0]
    Bt = out_ref.shape[0]
    L = BtL // Bt
    dh_pad = bconv_ref.shape[1]

    # Conv1d(kernel=3): one wide MXU matmul, all three taps fused along N.
    x = x_ref[...]                                                   # (BtL, dw) bf16
    y = jnp.dot(x, wconv_ref[...],
                preferred_element_type=jnp.float32)                  # (BtL, 3*dh_pad) f32
    y0 = y[:, :dh_pad]                 # tap k=0  -> contributes at t+1
    y1 = y[:, dh_pad:2 * dh_pad]       # tap k=1  -> contributes at t
    y2 = y[:, 2 * dh_pad:]             # tap k=2  -> contributes at t-1

    # Static sublane shifts (explicit zero-row concat: unambiguous semantics),
    # then mask shifted-in rows that belong to the neighbouring sample — this also
    # implements the Conv1d zero padding, so no padded input pass is needed.
    zrow = jnp.zeros((1, dh_pad), jnp.float32)
    left = jnp.concatenate([zrow, y0[:-1, :]], axis=0)               # left[r]  = y0[r-1]
    right = jnp.concatenate([y2[1:, :], zrow], axis=0)               # right[r] = y2[r+1]

    t = lax.broadcasted_iota(jnp.int32, (BtL, dh_pad), 0) % L        # time index per row
    left = jnp.where(t == 0, 0.0, left)
    right = jnp.where(t == L - 1, 0.0, right)

    act = jnp.maximum(y1 + left + right + bconv_ref[...], 0.0)       # bias + ReLU (f32)

    # MaxPool1d(max_len): per-sample max over L rows. (Reshape is layout-preserving
    # when L % 8 == 0; otherwise it is a small 128-lane relayout only.)
    pooled = jnp.max(act.reshape(Bt, L, dh_pad), axis=1)             # (Bt, dh_pad)

    # Linear(dh, 4) on lane-padded weights; bf16 MXU operands, f32 accumulate.
    out = jnp.dot(pooled.astype(jnp.bfloat16), wlin_ref[...],
                  preferred_element_type=jnp.float32) + blin_ref[...]
    out_ref[...] = out                                               # (Bt, n_pad)


def cnn_forward(x_ids, emb_table, wconv, bconv, wlin, blin,
                *, dw, dh, max_len, block_b=None):
    B, L = x_ids.shape
    assert L == max_len
    n_out = wlin.shape[0]

    dh_pad = _round_up(dh, 128)
    n_out_pad = _round_up(n_out, 128)
    Bt = block_b if block_b is not None else _pick_block_batch(B, L, dw, dh_pad)
    assert B % Bt == 0

    # --- glue (plain JAX), minimized ----------------------------------------
    # Embedding gather (bf16 so every following pass moves half the bytes).
    emb_bf = emb_table.astype(jnp.bfloat16)                 # PAD row stays exactly 0
    e = jnp.take(emb_bf, x_ids, axis=0)                     # (B, L, dw)  gather pass
    # torch .view(B, dw, L) bug: free bitcast-reshape; the scramble pass produces
    # the conv-ready (time-major, channels-last) layout in one HBM pass.
    x2 = jnp.transpose(e.reshape(B, dw, L), (0, 2, 1)).reshape(B * L, dw)

    # --- weights: three taps concatenated along N, lane-padded to 128 --------
    w_taps = [jnp.pad(wconv[:, :, k].T, ((0, 0), (0, dh_pad - dh))) for k in range(3)]
    wconv_wide = jnp.concatenate(w_taps, axis=1).astype(jnp.bfloat16)   # (dw, 3*dh_pad)
    bconv_p = jnp.pad(bconv, (0, dh_pad - dh)).reshape(1, dh_pad).astype(jnp.float32)
    wlin_p = jnp.pad(wlin.T, ((0, dh_pad - dh), (0, n_out_pad - n_out))
                     ).astype(jnp.bfloat16)                              # (dh_pad, n_pad)
    blin_p = jnp.pad(blin, (0, n_out_pad - n_out)).reshape(1, n_out_pad
                     ).astype(jnp.float32)

    weight_bytes = (wconv_wide.size * 2 + wlin_p.size * 2
                    + bconv_p.size * 4 + blin_p.size * 4)
    est = _vmem_cost(Bt, L, dw, dh_pad) + weight_bytes
    vmem_limit = int(min(64 << 20, max(32 << 20, 2 * est)))   # v7x-safe cap

    out = pl.pallas_call(
        cnn_kernel,
        out_shape=jax.ShapeDtypeStruct((B, n_out_pad), jnp.float32),
        grid=(B // Bt,),
        in_specs=[
            pl.BlockSpec((Bt * L, dw), lambda b: (b, 0)),
            pl.BlockSpec((dw, 3 * dh_pad), lambda b: (0, 0)),
            pl.BlockSpec((1, dh_pad), lambda b: (0, 0)),
            pl.BlockSpec((dh_pad, n_out_pad), lambda b: (0, 0)),
            pl.BlockSpec((1, n_out_pad), lambda b: (0, 0)),
        ],
        out_specs=pl.BlockSpec((Bt, n_out_pad), lambda b: (b, 0)),
        compiler_params=pltpu.CompilerParams(
            dimension_semantics=("parallel",),
            vmem_limit_bytes=vmem_limit),
    )(x2, wconv_wide, bconv_p, wlin_p, blin_p)
    return out[:, :n_out]                                    # (B, 4)


def cnn_reference(x_ids, emb_table, wconv, bconv, wlin, blin,
                  *, dw, dh, max_len):
    """Pure-JAX f32 reference matching the PyTorch forward exactly."""
    B, L = x_ids.shape
    e = jnp.take(emb_table, x_ids, axis=0)                   # (B, L, dw)
    xv = e.reshape(B, dw, L)                                 # .view bug
    xp = jnp.pad(xv, ((0, 0), (0, 0), (1, 1)))               # Conv1d padding=1
    out = jnp.zeros((B, dh, L), jnp.float32)
    for k in range(3):
        out = out + jnp.einsum('oc,bct->bot', wconv[:, :, k], xp[:, :, k:k + L])
    out = out + bconv[None, :, None]
    out = jnp.maximum(out, 0.0)                              # ReLU
    pooled = jnp.max(out, axis=2)                            # MaxPool1d(max_len)
    return pooled @ wlin.T + blin                            # Linear -> (B, 4)


if __name__ == "__main__":
    # Small, deterministic shapes consistent with the module structure.
    B = 16             # batch (grid gets 2 steps with Bt=8)
    max_len = 8        # sequence length == pool window (module uses 10)
    dw = 32            # embedding dim (module uses 300)
    dh = 16            # conv channels (module uses 50)
    n_vocab = 40
    PAD = n_vocab - 1  # matches PAD = len(words) + 1, n_vocab = len(words) + 2

    key = jax.random.PRNGKey(0)
    k_emb, k_wc, k_bc, k_wl, k_bl, k_x = jax.random.split(key, 6)

    emb_table = jax.random.normal(k_emb, (n_vocab, dw), jnp.float32)
    emb_table = emb_table.at[PAD].set(0.0)                   # padding_idx semantics
    wconv = 0.05 * jax.random.normal(k_wc, (dh, dw, 3), jnp.float32)
    bconv = 0.05 * jax.random.normal(k_bc, (dh,), jnp.float32)
    wlin = 0.10 * jax.random.normal(k_wl, (4, dh), jnp.float32)
    blin = 0.10 * jax.random.normal(k_bl, (4,), jnp.float32)

    x_ids = jax.random.randint(k_x, (B, max_len), 0, n_vocab, dtype=jnp.int32)
    x_ids = x_ids.at[0, -2:].set(PAD)                        # include some padding tokens

    y = cnn_forward(x_ids, emb_table, wconv, bconv, wlin, blin,
                    dw=dw, dh=dh, max_len=max_len)
    y = jax.block_until_ready(y)

    y_ref = cnn_reference(x_ids, emb_table, wconv, bconv, wlin, blin,
                          dw=dw, dh=dh, max_len=max_len)
    assert y.shape == (B, 4)
    # bf16 MXU operands (f32 accumulate) -> compare against the f32 reference
    # with a bf16-appropriate tolerance.
    assert jnp.allclose(y, y_ref, atol=3e-2, rtol=3e-2), (y, y_ref)

    print("KERNEL_OK")
</pallas_src>

<mosaic_0001>
module attributes {stable_mosaic.version = 11 : i64} {
  func.func @cnn_kernel(%arg0: i32, %arg1: memref<64x32xbf16, #tpu.memory_space<vmem>>, %arg2: memref<32x384xbf16, #tpu.memory_space<vmem>>, %arg3: memref<1x128xf32, #tpu.memory_space<vmem>>, %arg4: memref<128x128xbf16, #tpu.memory_space<vmem>>, %arg5: memref<1x128xf32, #tpu.memory_space<vmem>>, %arg6: memref<8x128xf32, #tpu.memory_space<vmem>>) attributes {dimension_semantics = [#tpu.dimension_semantics<parallel>], iteration_bounds = array<i64: 2>, scalar_prefetch = 0 : i64, scratch_operands = 0 : i64, tpu.core_type = #tpu.core_type<tc>, window_params = [{transform_indices = @transform_0, window_bounds = array<i64: 64, 32>}, {pipeline_mode = #tpu.pipeline_mode<synchronous>, transform_indices = @transform_1, window_bounds = array<i64: 32, 384>}, {pipeline_mode = #tpu.pipeline_mode<synchronous>, transform_indices = @transform_2, window_bounds = array<i64: 1, 128>}, {pipeline_mode = #tpu.pipeline_mode<synchronous>, transform_indices = @transform_3, window_bounds = array<i64: 128, 128>}, {pipeline_mode = #tpu.pipeline_mode<synchronous>, transform_indices = @transform_4, window_bounds = array<i64: 1, 128>}, {transform_indices = @transform_5, window_bounds = array<i64: 8, 128>}]} {
    %c0 = arith.constant 0 : index
    %c0_0 = arith.constant 0 : index
    %0 = vector.load %arg1[%c0, %c0_0] : memref<64x32xbf16, #tpu.memory_space<vmem>>, vector<64x32xbf16>
    %c0_1 = arith.constant 0 : index
    %c0_2 = arith.constant 0 : index
    %1 = vector.load %arg2[%c0_1, %c0_2] : memref<32x384xbf16, #tpu.memory_space<vmem>>, vector<32x384xbf16>
    %cst = arith.constant dense<0.000000e+00> : vector<64x384xf32>
    %2 = tpu.matmul %0, %1, %cst {dimension_numbers = #tpu.dot_dimension_numbers<[1], [0], [0], [1], [0, 0, 1, 1], [], []>} : vector<64x32xbf16>, vector<32x384xbf16>, vector<64x384xf32> -> vector<64x384xf32>
    %3 = vector.extract_strided_slice %2 {offsets = [0, 0], sizes = [64, 128], strides = [1, 1]} : vector<64x384xf32> to vector<64x128xf32>
    %4 = vector.extract_strided_slice %2 {offsets = [0, 128], sizes = [64, 128], strides = [1, 1]} : vector<64x384xf32> to vector<64x128xf32>
    %5 = vector.extract_strided_slice %2 {offsets = [0, 256], sizes = [64, 128], strides = [1, 1]} : vector<64x384xf32> to vector<64x128xf32>
    %cst_3 = arith.constant 0.000000e+00 : f32
    %6 = vector.broadcast %cst_3 : f32 to vector<1x128xf32>
    %7 = vector.extract_strided_slice %3 {offsets = [0, 0], sizes = [63, 128], strides = [1, 1]} : vector<64x128xf32> to vector<63x128xf32>
    %8 = tpu.concatenate %6, %7 in 0 : vector<1x128xf32>, vector<63x128xf32> -> vector<64x128xf32>
    %9 = vector.extract_strided_slice %5 {offsets = [1, 0], sizes = [63, 128], strides = [1, 1]} : vector<64x128xf32> to vector<63x128xf32>
    %10 = tpu.concatenate %9, %6 in 0 : vector<63x128xf32>, vector<1x128xf32> -> vector<64x128xf32>
    %11 = tpu.iota {dimensions = array<i32: 0>} : vector<64x128xi32>
    %c8_i32 = arith.constant 8 : i32
    %c0_i32 = arith.constant 0 : i32
    %12 = arith.cmpi eq, %c8_i32, %c0_i32 : i32
    %c1_i32 = arith.constant 1 : i32
    %13 = arith.select %12, %c1_i32, %c8_i32 : i32
    %14 = vector.broadcast %13 : i32 to vector<64x128xi32>
    %15 = arith.remsi %11, %14 : vector<64x128xi32>
    %c0_i32_4 = arith.constant 0 : i32
    %16 = vector.broadcast %c0_i32_4 : i32 to vector<64x128xi32>
    %17 = arith.cmpi ne, %15, %16 : vector<64x128xi32>
    %c0_i32_5 = arith.constant 0 : i32
    %18 = vector.broadcast %c0_i32_5 : i32 to vector<64x128xi32>
    %19 = arith.cmpi slt, %15, %18 : vector<64x128xi32>
    %c0_i32_6 = arith.constant 0 : i32
    %20 = arith.cmpi slt, %13, %c0_i32_6 : i32
    %21 = vector.broadcast %20 : i1 to vector<64x128xi1>
    %22 = vector.broadcast %21 : vector<64x128xi1> to vector<64x128xi1>
    %23 = arith.xori %19, %22 : vector<64x128xi1>
    %24 = arith.andi %23, %17 : vector<64x128xi1>
    %25 = vector.broadcast %13 : i32 to vector<64x128xi32>
    %26 = arith.addi %15, %25 : vector<64x128xi32>
    %27 = arith.select %24, %26, %15 : vector<64x128xi1>, vector<64x128xi32>
    %c0_i32_7 = arith.constant 0 : i32
    %28 = vector.broadcast %c0_i32_7 : i32 to vector<64x128xi32>
    %29 = arith.cmpi eq, %27, %28 : vector<64x128xi32>
    %cst_8 = arith.constant 0.000000e+00 : f32
    %30 = vector.broadcast %cst_8 : f32 to vector<64x128xf32>
    %31 = arith.select %29, %30, %8 : vector<64x128xi1>, vector<64x128xf32>
    %c7_i32 = arith.constant 7 : i32
    %32 = vector.broadcast %c7_i32 : i32 to vector<64x128xi32>
    %33 = arith.cmpi eq, %27, %32 : vector<64x128xi32>
    %cst_9 = arith.constant 0.000000e+00 : f32
    %34 = vector.broadcast %cst_9 : f32 to vector<64x128xf32>
    %35 = arith.select %33, %34, %10 : vector<64x128xi1>, vector<64x128xf32>
    %36 = arith.addf %4, %31 : vector<64x128xf32>
    %37 = arith.addf %36, %35 : vector<64x128xf32>
    %c0_10 = arith.constant 0 : index
    %c0_11 = arith.constant 0 : index
    %38 = vector.load %arg3[%c0_10, %c0_11] : memref<1x128xf32, #tpu.memory_space<vmem>>, vector<1x128xf32>
    %39 = vector.broadcast %38 : vector<1x128xf32> to vector<64x128xf32>
    %40 = arith.addf %37, %39 : vector<64x128xf32>
    %cst_12 = arith.constant 0.000000e+00 : f32
    %41 = vector.broadcast %cst_12 : f32 to vector<64x128xf32>
    %42 = arith.maximumf %40, %41 : vector<64x128xf32>
    %43 = vector.shape_cast %42 : vector<64x128xf32> to vector<8x8x128xf32>
    %cst_13 = arith.constant dense<0xFF800000> : vector<8x128xf32>
    %44 = vector.multi_reduction <maximumf>, %43, %cst_13 [1] : vector<8x8x128xf32> to vector<8x128xf32>
    %45 = arith.truncf %44 : vector<8x128xf32> to vector<8x128xbf16>
    %c0_14 = arith.constant 0 : index
    %c0_15 = arith.constant 0 : index
    %46 = vector.load %arg4[%c0_14, %c0_15] : memref<128x128xbf16, #tpu.memory_space<vmem>>, vector<128x128xbf16>
    %cst_16 = arith.constant dense<0.000000e+00> : vector<8x128xf32>
    %47 = tpu.matmul %45, %46, %cst_16 {dimension_numbers = #tpu.dot_dimension_numbers<[1], [0], [0], [1], [0, 0, 1, 1], [], []>} : vector<8x128xbf16>, vector<128x128xbf16>, vector<8x128xf32> -> vector<8x128xf32>
    %c0_17 = arith.constant 0 : index
    %c0_18 = arith.constant 0 : index
    %48 = vector.load %arg5[%c0_17, %c0_18] : memref<1x128xf32, #tpu.memory_space<vmem>>, vector<1x128xf32>
    %49 = vector.broadcast %48 : vector<1x128xf32> to vector<8x128xf32>
    %50 = arith.addf %47, %49 : vector<8x128xf32>
    %c0_19 = arith.constant 0 : index
    %c0_20 = arith.constant 0 : index
    %51 = vector.load %arg6[%c0_19, %c0_20] : memref<8x128xf32, #tpu.memory_space<vmem>>, vector<8x128xf32>
    tpu.vector_store %arg6[%c0_19, %c0_20], %50 {strides = array<i32>} : memref<8x128xf32, #tpu.memory_space<vmem>>, vector<8x128xf32>,
    return
  }
  func.func @transform_0(%arg0: i32) -> (i32, i32) {
    %c0_i32 = arith.constant 0 : i32
    %c0_i32_0 = arith.constant 0 : i32
    return %arg0, %c0_i32 : i32, i32
  }
  func.func @transform_1(%arg0: i32) -> (i32, i32) {
    %c0_i32 = arith.constant 0 : i32
    %c0_i32_0 = arith.constant 0 : i32
    %c0_i32_1 = arith.constant 0 : i32
    return %c0_i32, %c0_i32_0 : i32, i32
  }
  func.func @transform_2(%arg0: i32) -> (i32, i32) {
    %c0_i32 = arith.constant 0 : i32
    %c0_i32_0 = arith.constant 0 : i32
    %c0_i32_1 = arith.constant 0 : i32
    return %c0_i32, %c0_i32_0 : i32, i32
  }
  func.func @transform_3(%arg0: i32) -> (i32, i32) {
    %c0_i32 = arith.constant 0 : i32
    %c0_i32_0 = arith.constant 0 : i32
    %c0_i32_1 = arith.constant 0 : i32
    return %c0_i32, %c0_i32_0 : i32, i32
  }
  func.func @transform_4(%arg0: i32) -> (i32, i32) {
    %c0_i32 = arith.constant 0 : i32
    %c0_i32_0 = arith.constant 0 : i32
    %c0_i32_1 = arith.constant 0 : i32
    return %c0_i32, %c0_i32_0 : i32, i32
  }
  func.func @transform_5(%arg0: i32) -> (i32, i32) {
    %c0_i32 = arith.constant 0 : i32
    %c0_i32_0 = arith.constant 0 : i32
    return %arg0, %c0_i32 : i32, i32
  }
}

</mosaic_0001>

<bundles_post_ra>
// kernel: tpu_custom_call.1
= control target key start
LH: loop header
LB: loop body
LE: loop exit
PB: predicated region body
PF: predicated region fallthrough
CT: control target
= control target key end

     0   :  { %10 = vsyncpa [#allocation3], 0  ;;  %s1604_s0 = inlined_call_operand.vmem [shape: bf16[128,32], index: 0, kind: input, shape index: {}]   ;;  %s1605_s1 = inlined_call_operand.hbm [shape: bf16[32,384], index: 1, kind: input, shape index: {}]   ;;  %s1606_s2 = inlined_call_operand.vmem [shape: f32[1,128], index: 2, kind: input, shape index: {}]   ;;  %s1607_s3 = inlined_call_operand.vmem [shape: bf16[128,128], index: 3, kind: input, shape index: {}]   ;;  %s1608_s4 = inlined_call_operand.vmem [shape: f32[1,128], index: 4, kind: input, shape index: {}]   ;;  %s1609_s5 = inlined_call_operand.hbm [shape: f32[16,128], index: 5, kind: output, shape index: {}]  }
   0x1   :  { %11 = vsyncpa [#allocation4], 0 }
   0x2   :  { %13 = vsyncpa [#allocation4 + $0x1], 0  ;;  %s1283_s18 = smov 0   ;;  %s1285_s19 = smov 0  }
   0x3   :  { %s1287_s20 = smov 0   ;;  %s1289_s21 = smov 0  }
   0x4 LB: > { %s1304_s22 = sadd.s32 4294967295, %s1244_s21   ;;  %s987_s23 = sadd.s32 4294967294, %s1244_s21   ;;  %s1244_s21 = sphi %s1289_s21, %s1657_s21   ;;  %s1240_s20 = sphi %s1287_s20, %s1656_s20   ;;  %s1236_s19 = sphi %s1285_s19, %s1655_s19   ;;  %s1232_s18 = sphi %s1283_s18, %s1654_s18  }
   0x5   : > { %s1308_s24 = sadd.s32 1, %s1244_s21   ;;  %s136_s25 = sadd.s32 1, %s1240_s20 }
   0x6   : > { %s133_s26 = ssub.s32 %s1244_s21, %s1308_s24  ;;  %p146_p0 = scmp.ne.s32.totalorder %s1240_s20, %s1236_s19 }
   0x7   : > { %p134_p1 = scmp.eq.s32.totalorder %s133_s26, 0  ;;  %p147_p2 = scmp.eq.s32.totalorder %s1304_s22, 1 }
   0x8   : > { %p152_p3 = scmp.ne.s32.totalorder %s1236_s19, %s1232_s18  ;;  %p153_p4 = scmp.eq.s32.totalorder %s987_s23, 1 }
   0x9   : > { %s1319_s27 = scalar_select %p134_p1, %s1240_s20, %s136_s25  }
   0xa   : > { %p1321_p5 = por %p147_p2, %p146_p0  ;;  %p1325_p6 = por %p153_p4, %p152_p3 }
   0xb   : > { %p988_p7 = scmp.ge.s32.totalorder %s1244_s21, 1  ;;  %p160_p8 = scmp.lt.s32.totalorder %s1244_s21, 3 }
   0xc   : > { %s1613_s28 = scalar_select %p1321_p5, 1, 0 }
   0xd   : > { %s1614_s29 = scalar_select %p1325_p6, 1, 0 }
   0xe   : > { %p1610_p9 = scmp.eq.s32.totalorder %s1304_s22, 0  ;;  %p1332_p10 = pnand %p988_p7, %p160_p8 }
   0xf   : > { %s1246_s6 = smov [#allocation2]   ;;  %s1150_s11 = scalar_lea.hbm %s1605_s1, 768 }
  0x10   : > { %s1615_s30 = scalar_select %p1332_p10, 1, 0 }
  0x11   : > { %s172_s7 = sshll.u32 %s1246_s6, 4  ;;  %p1081_p11 = pneg %p1332_p10  ;;  %s173_s7 = int_to_ptr.vmem [resolvable:$true] %s172_s7 }
  0x12   : > { %p1151_p13 = scmp.ne.s32.totalorder %s1605_s1, %s1150_s11  ;;  %p1157_p3 = scmp.lt.u32.totalorder %s1150_s11, %s1605_s1 }
  0x13   : > { %p1340_p12 = pnand %p1610_p9, %p1081_p11 }
  0x15   : > { %p1152_p0 = pneg %p1340_p12 }
  0x17   : > { %p1153_p1 = pnand %p1152_p0, %p1151_p13 }
  0x19   : > { %p1154_p2 = pneg %p1153_p1 }
  0x1b   : > { %p1159_p4 = pnand %p1157_p3, %p1154_p2 }
  0x1d   : > { %1162 = shalt.err (!%p1159_p4)
}
  0x1e   : > { %s1163_s16 = scalar_lea.vmem %s173_s7, 768  ;;  %p1171_p9 = scmp.lt.s32.totalorder %s173_s7, %s173_s7 }
  0x1f   : > { %p1164_p7 = scmp.ne.s32.totalorder %s173_s7, %s1163_s16  ;;  %p1172_p6 = scmp.lt.s32.totalorder %s1163_s16, %s1163_s16 }
  0x21   : > { %p1166_p8 = pnand %p1164_p7, %p1152_p0  ;;  %p1173_p5 = por %p1172_p6, %p1171_p9 }
  0x23   : > { %p1167_p11 = pneg %p1166_p8 }
  0x25   : > { %p1174_p10 = pnand %p1173_p5, %p1167_p11 }
  0x27   : > { %1177 = shalt.err (!%p1174_p10)
}
  0x28   : > { %s1247_s17 = smov 192   ;;  %s1248_s23 = smov 12  }
  0x29   : > { %1084 = dma.hbm_to_vmem [thread:$0]  (!%p1340_p12), %s1605_s1, 768, %s173_s7, [#allocation3], %s1247_s17, %s1247_s17, %s1248_s23  }
  0x2a   : > { %p1617_p13 = scmp.ne.s32.totalorder %s1615_s30, 0 }
  0x2b   : > { %p1618_p1 = scmp.eq.s32.totalorder (!%p1617_p13), %s1304_s22, 0 }
  0x2c   : > { %206 = sbr.rel (%p1617_p13) target bundleno = 559 (0x22f), region = 40 }
  0x33   : > { %1223 = dma.done.wait (%p1618_p1), [#allocation3], 768   ;;  %p1619_p0 = pmov %p1618_p1 }
  0x34   : > { %s994_s6 = sshll.u32 %s1304_s22, 3  ;;  %v1249_v0 = vmov 0   ;;  %v1130_v1 = vld [vmem:[#allocation2 + $0x4] ss:$12 sps:$4 sm:$0xff]   ;;  %v1132_v2 = vld [vmem:[#allocation2 + $0x8] ss:$12 sps:$4 sm:$0xff]   ;;  %v526_v20 = vlaneseq }
  0x35   : > { %1225 = vsyncadd (%p1619_p0), [#allocation3], 4294966528  ;;  %354 = vmatprep.mubr.bf16.mxu0 %v1249_v0  ;;  %p235_p5 = scmp.lt.s32.totalorder %s994_s6, 15  ;;  %322 = vmatprep.subr.bf16.mxu0 %v1130_v1  ;;  %v1133_v3 = vld [vmem:[#allocation2] ss:$12 sps:$4 sm:$0xff]   ;;  %vm309_vm0 = vcmask 261120  }
  0x36   : > { %1043 = vmatprep.subr.bf16.mxu1 %v1132_v2  ;;  %v1134_v4 = vld [vmem:[#allocation2 + $0x1c] ss:$12 sps:$4 sm:$0xff]   ;;  %323 = vmatpush1.bf16.msra.mxu0 %v1133_v3  ;;  %v1136_v5 = vld [vmem:[#allocation2 + $0x20] ss:$12 sps:$4 sm:$0xff]   ;;  %v1137_v6 = vld [vmem:[#allocation2 + $0x18] ss:$12 sps:$4 sm:$0xff]  }
  0x37   : > { %s1659_s6 = smov (!%p235_p5, %s994_s6), 15  ;;  %1044 = vmatpush3.bf16.msra.mxu1 %v1132_v2  ;;  %324 = vmatprep.subr.bf16.mxu0 %v1134_v4  ;;  %v1142_v11 = vld [vmem:[%s1607_s3] sm:$0xff]   ;;  %v1250_v12 = vmov 0.0   ;;  %v1143_v13 = vld [vmem:[%s1607_s3 + $0x8] sm:$0xff]   ;;  %v1144_v14 = vld [vmem:[%s1607_s3 + $0x10] sm:$0xff]   ;;  %vm1251_vm1 = vmmov 0  }
  0x38   : > { %s995_s8 = sshll.u32 %s1659_s6, 2  ;;  %1045 = vmatprep.subr.bf16.mxu1 %v1136_v5  ;;  %v1145_v15 = vld [vmem:[%s1607_s3 + $0x18] sm:$0xff]   ;;  %v1146_v16 = vld [vmem:[%s1607_s3 + $0x20] sm:$0xff]   ;;  %v1147_v17 = vld [vmem:[%s1607_s3 + $0x28] sm:$0xff]   ;;  %v1402_v21 = vshrl.u32 %v526_v20, 7  ;;  %vm468_vm2 = vcmask 1040384  }
  0x39   : > { %s238_s9 = scalar_lea.vmem %s1604_s0, %s995_s8  ;;  %v1148_v18 = vld [vmem:[%s1607_s3 + $0x30] sm:$0xff]   ;;  %v1149_v19 = vld [vmem:[%s1607_s3 + $0x38] sm:$0xff]   ;;  %vm501_vm7 = vcmask 1046528   ;;  %v1445_v61 = vld [vmem:[%s1606_s2] ss:$0 sm:$0xff]  ;;  %s231_s12 = sand.u32 1, %s1236_s19  }
  0x3a   : > { %v1138_v7 = vld [vmem:[%s238_s9] sm:$0xff]   ;;  %v1139_v8 = vld [vmem:[%s238_s9 + $0x8] sm:$0xff]   ;;  %325 = vmatpush1.bf16.msra.mxu0 %v1137_v6  ;;  %v1140_v9 = vld [vmem:[%s238_s9 + $0x10] sm:$0xff]   ;;  %v528_v22 = vadd.s32 8, %v1402_v21  ;;  %v539_v23 = vand.u32 7, %v1402_v21  ;;  %v529_v25 = vadd.s32 16, %v1402_v21 }
  0x3b   : > { %1047 = vmatprep.mubr.msk.bf16.mxu1 %vm309_vm0, %v1138_v7  ;;  %1046 = vmatpush3.bf16.msra.mxu1 %v1136_v5  ;;  %v1141_v10 = vld [vmem:[%s238_s9 + $0x18] sm:$0xff]   ;;  %v530_v28 = vadd.s32 24, %v1402_v21  ;;  %v1409_v29 = vadd.s32 32, %v1402_v21  ;;  %v532_v54 = vadd.s32 40, %v1402_v21  ;;  %v534_v32 = vadd.s32 56, %v1402_v21  ;;  %s993_s13 = sshll.u32 %s231_s12, 3 }
  0x3c   : > { %1055 = vmatprep.subr.bf16.mxu0 %v1250_v12  ;;  %v546_v24 = vand.u32 7, %v528_v22  ;;  %vm1411_vm3 = vcmp.eq.s32.totalorder %v539_v23, 0  ;;  %vm1415_vm4 = vcmp.eq.s32.totalorder %v539_v23, 7  ;;  %v553_v46 = vand.u32 7, %v529_v25  ;;  %s1025_s16 = sshll.u32 %s1304_s22, 7  ;;  %s233_s17 = scalar_lea.vmem [#allocation5], %s993_s13 }
  0x3d   : > { %1006 = vmatmul.mubr.msk.bf16.vlgmr.msra.gmra.mrb[0].mxu0 %vm309_vm0, %v1138_v7  ;;  %v560_v49 = vand.u32 7, %v530_v28  ;;  %v567_v50 = vand.u32 7, %v1409_v29  ;;  %s916_s23 = sshll.u32 %s233_s17, 4  ;;  %s1562_s6 = scalar_lea.hbm %s1609_s5, %s1025_s16  ;;  %s1564_s23 = int_to_ptr.vmem [resolvable:$true] %s916_s23 }
  0x3e   : > { %1048 = vmatmul.mubr.msk.bf16.vlgmr.msra.gmra.mrb[0].mxu1 %vm309_vm0, %v1139_v8  ;;  %364 = vmatprep.mubr.bf16.mxu0 %v1249_v0  ;;  %vm1419_vm5 = vcmp.eq.s32.totalorder %v546_v24, 0  ;;  %vm1423_vm6 = vcmp.eq.s32.totalorder %v546_v24, 7  ;;  %vm1447_vm8 = vcmp.eq.s32.totalorder %v553_v46, 7  ;;  %vm1451_vm9 = vcmp.eq.s32.totalorder %v553_v46, 0  ;;  %s903_s8 = scalar_lea.sflag [#allocation4], %s231_s12  ;;  %s1178_s22 = scalar_lea.vmem %s1564_s23, 128 }
  0x3f   : > { %1051 = vmatprep.mubr.msk.bf16.mxu1 %vm309_vm0, %v1140_v9  ;;  %1056 = vmatpush3.bf16.msra.mxu0 %v1142_v11  ;;  %vm1455_vm10 = vcmp.eq.s32.totalorder %v560_v49, 0  ;;  %vm1459_vm11 = vcmp.eq.s32.totalorder %v560_v49, 7  ;;  %vm1463_vm12 = vcmp.eq.s32.totalorder %v567_v50, 0  ;;  %v1468_v11 = vadd.s32 48, %v1402_v21  ;;  %p1179_p6 = scmp.ne.s32.totalorder %s1564_s23, %s1178_s22  ;;  %p1652_p9 = scmp.ne.s32.totalorder %s1613_s28, 0 }
  0x40   : > { %1057 = vmatprep.subr.bf16.mxu0 %v1250_v12  ;;  %vm1489_vm13 = vcmp.eq.s32.totalorder %v567_v50, 7  ;;  %s1252_s7 = smov [#allocation5]  }
  0x41   : > { %p1180_p10 = pnand %p1179_p6, %p1652_p9  ;;  %s1182_s30 = sshll.u32 %s1252_s7, 4  ;;  %s1183_s30 = int_to_ptr.vmem [resolvable:$false] %s1182_s30 }
  0x42   : > { %s1184_s9 = scalar_lea.vmem %s1183_s30, 256  ;;  %p1185_p2 = scmp.lt.s32.totalorder %s1564_s23, %s1183_s30 }
  0x43   : > { %1058 = vmatpush3.bf16.msra.mxu0 %v1143_v13  ;;  %p1181_p12 = pneg %p1180_p10  ;;  %p1186_p3 = scmp.lt.s32.totalorder %s1184_s9, %s1178_s22 }
  0x44   : > { %1059 = vmatprep.subr.bf16.mxu0 %v1250_v12 }
  0x45   : > { %1007 = vmatmul.mubr.msk.bf16.gmra.mrb[4].mxu0 %vm309_vm0, %v1139_v8  ;;  %p1187_p4 = por %p1186_p3, %p1185_p2 }
  0x46   : > { %1052 = vmatmul.mubr.msk.bf16.gmra.mrb[4].mxu1 %vm309_vm0, %v1141_v10  ;;  %374 = vmatprep.mubr.bf16.mxu0 %v1249_v0 }
  0x47   : > { %1060 = vmatpush3.bf16.msra.mxu0 %v1144_v14  ;;  %p1188_p7 = pnand %p1187_p4, %p1181_p12 }
  0x48   : > { %1061 = vmatprep.subr.bf16.mxu0 %v1250_v12 }
  0x4b   : > { %1062 = vmatpush3.bf16.msra.mxu0 %v1145_v15 }
  0x4c   : > { %1063 = vmatprep.subr.bf16.mxu0 %v1250_v12 }
  0x4d   : > { %1008 = vmatmul.mubr.msk.bf16.gmra.mrb[8].mxu0 %vm309_vm0, %v1140_v9 }
  0x4e   : > { %384 = vmatprep.mubr.bf16.mxu0 %v1249_v0 }
  0x4f   : > { %1064 = vmatpush3.bf16.msra.mxu0 %v1146_v16 }
  0x50   : > { %1065 = vmatprep.subr.bf16.mxu0 %v1250_v12 }
  0x53   : > { %1066 = vmatpush3.bf16.msra.mxu0 %v1147_v17 }
  0x54   : > { %1067 = vmatprep.subr.bf16.mxu0 %v1250_v12 }
  0x55   : > { %1009 = vmatmul.mubr.msk.bf16.gmra.mrb[12].mxu0 %vm309_vm0, %v1141_v10  ;;  %v574_v10 = vand.u32 7, %v532_v54  ;;  %v588_v54 = vand.u32 7, %v534_v32  ;;  %vm797_vm0 = vcmask 1041409  }
  0x56   : > { %1071 = vmatprep.mubr.msk.bf16.mxu0 %vm1251_vm1, %v1250_v12 }
  0x57   : > { %1068 = vmatpush3.bf16.msra.mxu0 %v1148_v18  ;;  %vm1493_vm14 = vcmp.eq.s32.totalorder %v574_v10, 0  ;;  %vm1503_vm15 = vcmp.eq.s32.totalorder %v574_v10, 7 }
  0x58   : > { %1069 = vmatprep.subr.bf16.mxu0 %v1250_v12 }
  0x5b   : > { %1070 = vmatpush3.bf16.msra.mxu0 %v1149_v19 }
 0x110   : > { %v356_v26 = vpop.f32.mrb[0].mxu0 }
 0x111   : > { %v1049_v27 = vpop.f32.mrb[0].mxu1  ;;  %v469_v30 = vrot.slane %v356_v26, 7  ;;  %v358_v31 = vpop.f32.mrb[1].mxu0 }
 0x112   : > { %v429_v34 = vpop.f32.mrb[1].mxu1  ;;  %v505_v36 = vrot.slane %v1049_v27, 1  ;;  %v360_v38 = vpop.f32.mrb[2].mxu0 }
 0x113   : > { %v502_v37 = vrot.slane %v429_v34, 1  ;;  %v1050_v39 = vpop.f32.mrb[2].mxu1  ;;  %v492_v41 = vsel %vm468_vm2, 0.0, %v469_v30  ;;  %v470_v42 = vrot.slane %v360_v38, 7  ;;  %v362_v44 = vpop.f32.mrb[3].mxu0 }
 0x114   : > { %v507_v43 = vrot.slane %v1050_v39, 1  ;;  %v432_v45 = vpop.f32.mrb[3].mxu1  ;;  %v639_v47 = vsel %vm1411_vm3, 0.0, %v492_v41  ;;  %vm1519_vm3 = vcmp.eq.s32.totalorder %v588_v54, 7 }
 0x115   : > { %v503_v48 = vrot.slane %v432_v45, 1  ;;  %v663_v51 = vadd.f32 %v639_v47, %v358_v31  ;;  %v471_v52 = vsel %vm468_vm2, %v469_v30, %v470_v42 }
 0x116   : > { %v508_v53 = vsel %vm501_vm7, %v505_v36, %v507_v43  ;;  %v640_v55 = vsel %vm1419_vm5, 0.0, %v471_v52  ;;  %vm1532_vm5 = vcmp.eq.s32.totalorder %v588_v54, 0 }
 0x117   : > { %v504_v56 = vsel %vm501_vm7, %v502_v37, %v503_v48  ;;  %v506_v57 = vsel %vm501_vm7, %v503_v48, %v505_v36  ;;  %v664_v58 = vadd.f32 %v640_v55, %v362_v44  ;;  %v657_v13 = vsel %vm1447_vm8, 0.0, %v508_v53 }
 0x118   : > { %v655_v59 = vsel %vm1415_vm4, 0.0, %v504_v56  ;;  %v656_v60 = vsel %vm1423_vm6, 0.0, %v506_v57  ;;  %v366_v0 = vpop.f32.mrb[4].mxu0  ;;  %v581_v53 = vand.u32 7, %v1468_v11  ;;  %vm799_vm6 = vcmask 1042434  }
 0x119   : > { %v671_v63 = vadd.f32 %v663_v51, %v655_v59  ;;  %v1053_v4 = vpop.f32.mrb[4].mxu1  ;;  %v672_v5 = vadd.f32 %v664_v58, %v656_v60  ;;  %v472_v6 = vrot.slane %v366_v0, 7  ;;  %v368_v7 = vpop.f32.mrb[5].mxu0  ;;  %vm805_vm8 = vcmask 1045509  }
 0x11a   : > { %v445_v8 = vpop.f32.mrb[5].mxu1  ;;  %v370_v14 = vpop.f32.mrb[6].mxu0  ;;  %v513_v15 = vrot.slane %v1053_v4, 1  ;;  %vm1515_vm1 = vcmp.eq.s32.totalorder %v581_v53, 7  ;;  %vm1527_vm4 = vcmp.eq.s32.totalorder %v581_v53, 0 }
 0x11b   : > { %v686_v12 = vadd.f32 %v1445_v61, %v671_v63  ;;  %v509_v16 = vrot.slane %v445_v8, 1  ;;  %v1473_v17 = vpop.f32.mrb[6].mxu1  ;;  %v687_v18 = vadd.f32 %v1445_v61, %v672_v5  ;;  %v473_v19 = vsel %vm468_vm2, %v470_v42, %v472_v6  ;;  %v372_v22 = vpop.f32.mrb[7].mxu0 }
 0x11c   : > { %v474_v20 = vrot.slane %v370_v14, 7  ;;  %v515_v23 = vrot.slane %v1473_v17, 1  ;;  %v448_v24 = vpop.f32.mrb[7].mxu1  ;;  %v641_v26 = vsel %vm1451_vm9, 0.0, %v473_v19  ;;  %vm807_vm9 = vcmask 1046534  }
 0x11d   : > { %v694_v25 = vmax.f32 %v686_v12, 0.0  ;;  %v510_v27 = vsel %vm501_vm7, %v507_v43, %v509_v16  ;;  %v511_v28 = vrot.slane %v448_v24, 1  ;;  %v695_v29 = vmax.f32 %v687_v18, 0.0 }
 0x11e   : > { %v665_v30 = vadd.f32 %v641_v26, %v368_v7  ;;  %v475_v31 = vsel %vm468_vm2, %v472_v6, %v474_v20  ;;  %v658_v35 = vsel %vm1459_vm11, 0.0, %v510_v27  ;;  %v1500_v44 = vsel %vm501_vm7, %v513_v15, %v515_v23 }
 0x11f   : > { %v702_v33 = vrot.slane %v694_v25, 4  ;;  %v642_v34 = vsel %vm1455_vm10, 0.0, %v475_v31  ;;  %v512_v36 = vsel %vm501_vm7, %v509_v16, %v511_v28  ;;  %v708_v37 = vrot.slane %v695_v29, 4 }
 0x120   : > { %v673_v38 = vadd.f32 %v665_v30, %v657_v13  ;;  %v666_v39 = vadd.f32 %v642_v34, %v372_v22  ;;  %v514_v40 = vsel %vm501_vm7, %v511_v28, %v513_v15  ;;  %v376_v42 = vpop.f32.mrb[8].mxu0  ;;  %v659_v0 = vsel %vm1489_vm13, 0.0, %v512_v36 }
 0x121   : > { %v703_v41 = vmax.f32 %v694_v25, %v702_v33  ;;  %v709_v45 = vmax.f32 %v695_v29, %v708_v37  ;;  %v476_v48 = vrot.slane %v376_v42, 7  ;;  %v378_v49 = vpop.f32.mrb[9].mxu0  ;;  %v660_v15 = vsel %vm1503_vm15, 0.0, %v514_v40 }
 0x122   : > { %v688_v46 = vadd.f32 %v1445_v61, %v673_v38  ;;  %v674_v47 = vadd.f32 %v666_v39, %v658_v35  ;;  %v380_v50 = vpop.f32.mrb[10].mxu0  ;;  %v525_v21 = vsel %vm501_vm7, %v515_v23, 0.0  ;;  %v661_v53 = vsel %vm1515_vm1, 0.0, %v1500_v44 }
 0x123   : > { %v704_v51 = vrot.slane %v703_v41, 2  ;;  %v710_v55 = vrot.slane %v709_v45, 2  ;;  %v477_v58 = vsel %vm468_vm2, %v474_v20, %v476_v48  ;;  %v382_v59 = vpop.f32.mrb[11].mxu0  ;;  %v478_v63 = vrot.slane %v380_v50, 7 }
 0x124   : > { %v696_v56 = vmax.f32 %v688_v46, 0.0  ;;  %v689_v57 = vadd.f32 %v1445_v61, %v674_v47  ;;  %v643_v62 = vsel %vm1463_vm12, 0.0, %v477_v58  ;;  %vm803_vm7 = vcmask 1044484  }
 0x125   : > { %v705_v60 = vmax.f32 %v703_v41, %v704_v51  ;;  %v711_v1 = vmax.f32 %v709_v45, %v710_v55  ;;  %v667_v4 = vadd.f32 %v643_v62, %v378_v49  ;;  %v479_v6 = vsel %vm468_vm2, %v476_v48, %v478_v63 }
 0x126   : > { %v714_v2 = vrot.slane %v696_v56, 4  ;;  %v697_v3 = vmax.f32 %v689_v57, 0.0  ;;  %v644_v14 = vsel %vm1493_vm14, 0.0, %v479_v6  ;;  %vm809_vm10 = vcmask 1047559  }
 0x127   : > { %v706_v5 = vrot.slane %v705_v60, 1  ;;  %v712_v8 = vrot.slane %v711_v1, 1  ;;  %v675_v11 = vadd.f32 %v667_v4, %v659_v0  ;;  %v668_v27 = vadd.f32 %v644_v14, %v382_v59 }
 0x128   : > { %v715_v10 = vmax.f32 %v696_v56, %v714_v2  ;;  %v720_v9 = vrot.slane %v697_v3, 4  ;;  %v386_v16 = vpop.f32.mrb[12].mxu0 }
 0x129   : > { %v707_v13 = vmax.f32 %v705_v60, %v706_v5  ;;  %v713_v19 = vmax.f32 %v711_v1, %v712_v8  ;;  %v690_v24 = vadd.f32 %v1445_v61, %v675_v11  ;;  %v388_v25 = vpop.f32.mrb[13].mxu0  ;;  %v480_v28 = vrot.slane %v386_v16, 7 }
 0x12a   : > { %v716_v20 = vrot.slane %v715_v10, 2  ;;  %v721_v22 = vmax.f32 %v697_v3, %v720_v9  ;;  %v390_v29 = vpop.f32.mrb[14].mxu0  ;;  %v676_v37 = vadd.f32 %v668_v27, %v660_v15  ;;  %v662_v60 = vsel %vm1519_vm3, 0.0, %v525_v21 }
 0x12b   : > { %v750_v26 = vpack.c.bf16 %v707_v13, %v707_v13  ;;  %v751_v31 = vpack.c.bf16 %v713_v19, %v713_v19  ;;  %v698_v34 = vmax.f32 %v690_v24, 0.0  ;;  %v392_v35 = vpop.f32.mrb[15].mxu0  ;;  %v481_v38 = vsel %vm468_vm2, %v478_v63, %v480_v28 }
 0x12c   : > { %v717_v32 = vmax.f32 %v715_v10, %v716_v20  ;;  %v722_v33 = vrot.slane %v721_v22, 2  ;;  %v482_v39 = vrot.slane %v390_v29, 7  ;;  %v691_v45 = vadd.f32 %v1445_v61, %v676_v37 }
 0x12d   : > { %v789_v36 = vunpack.c.l.b16 %v750_v26  ;;  %v790_v40 = vunpack.c.l.b16 %v751_v31  ;;  %v726_v43 = vrot.slane %v698_v34, 4  ;;  %v645_v46 = vsel %vm1527_vm4, 0.0, %v481_v38 }
 0x12e   : > { %v718_v41 = vrot.slane %v717_v32, 1  ;;  %v723_v42 = vmax.f32 %v721_v22, %v722_v33  ;;  %v483_v47 = vsel %vm468_vm2, %v480_v28, %v482_v39  ;;  %v699_v52 = vmax.f32 %v691_v45, 0.0 }
 0x12f   : > { %v798_v49 = vsel %vm797_vm0, %v790_v40, %v789_v36  ;;  %v727_v50 = vmax.f32 %v698_v34, %v726_v43  ;;  %v669_v17 = vadd.f32 %v645_v46, %v388_v25  ;;  %v646_v23 = vsel %vm1532_vm5, 0.0, %v483_v47 }
 0x130   : > { %v719_v48 = vmax.f32 %v717_v32, %v718_v41  ;;  %v724_v51 = vrot.slane %v723_v42, 1  ;;  %v670_v57 = vadd.f32 %v646_v23, %v392_v35  ;;  %v732_v58 = vrot.slane %v699_v52, 4 }
 0x131   : > { %v728_v56 = vrot.slane %v727_v50, 2  ;;  %v677_v59 = vadd.f32 %v669_v17, %v661_v53  ;;  %vm801_vm2 = vcmask 1043459  }
 0x132   : > { %v752_v54 = vpack.c.bf16 %v719_v48, %v719_v48  ;;  %v725_v55 = vmax.f32 %v723_v42, %v724_v51  ;;  %v678_v1 = vadd.f32 %v670_v57, %v662_v60  ;;  %v733_v2 = vmax.f32 %v699_v52, %v732_v58  ;;  %v1015_v42 = vld [vmem:[%s1608_s4] ss:$0 sm:$0xff] }
 0x133   : > { %v729_v0 = vmax.f32 %v727_v50, %v728_v56  ;;  %v692_v44 = vadd.f32 %v1445_v61, %v677_v59 }
 0x134   : > { %v791_v62 = vunpack.c.l.b16 %v752_v54  ;;  %v753_v63 = vpack.c.bf16 %v725_v55, %v725_v55  ;;  %v693_v6 = vadd.f32 %v1445_v61, %v678_v1  ;;  %v734_v7 = vrot.slane %v733_v2, 2 }
 0x135   : > { %v730_v5 = vrot.slane %v729_v0, 1  ;;  %v700_v8 = vmax.f32 %v692_v44, 0.0 }
 0x136   : > { %v800_v3 = vsel %vm799_vm6, %v791_v62, %v798_v49  ;;  %v792_v4 = vunpack.c.l.b16 %v753_v63  ;;  %v701_v11 = vmax.f32 %v693_v6, 0.0  ;;  %v735_v12 = vmax.f32 %v733_v2, %v734_v7 }
 0x137   : > { %v731_v10 = vmax.f32 %v729_v0, %v730_v5  ;;  %v738_v13 = vrot.slane %v700_v8, 4 }
 0x138   : > { %v802_v9 = vsel %vm801_vm2, %v792_v4, %v800_v3  ;;  %v744_v15 = vrot.slane %v701_v11, 4  ;;  %v736_v16 = vrot.slane %v735_v12, 1 }
 0x139   : > { %v754_v14 = vpack.c.bf16 %v731_v10, %v731_v10  ;;  %v739_v18 = vmax.f32 %v700_v8, %v738_v13 }
 0x13a   : > { %v745_v20 = vmax.f32 %v701_v11, %v744_v15  ;;  %v737_v22 = vmax.f32 %v735_v12, %v736_v16 }
 0x13b   : > { %v793_v19 = vunpack.c.l.b16 %v754_v14  ;;  %v740_v24 = vrot.slane %v739_v18, 2 }
 0x13c   : > { %v746_v26 = vrot.slane %v745_v20, 2  ;;  %v755_v27 = vpack.c.bf16 %v737_v22, %v737_v22 }
 0x13d   : > { %v804_v25 = vsel %vm803_vm7, %v793_v19, %v802_v9  ;;  %v741_v61 = vmax.f32 %v739_v18, %v740_v24 }
 0x13e   : > { %v747_v28 = vmax.f32 %v745_v20, %v746_v26  ;;  %v794_v29 = vunpack.c.l.b16 %v755_v27 }
 0x13f   : > { %v742_v30 = vrot.slane %v741_v61, 1 }
 0x140   : > { %v748_v31 = vrot.slane %v747_v28, 1  ;;  %v806_v32 = vsel %vm805_vm8, %v794_v29, %v804_v25 }
 0x141   : > { %v743_v33 = vmax.f32 %v741_v61, %v742_v30 }
 0x142   : > { %v749_v34 = vmax.f32 %v747_v28, %v748_v31 }
 0x143   : > { %v756_v35 = vpack.c.bf16 %v743_v33, %v743_v33 }
 0x144   : > { %v757_v36 = vpack.c.bf16 %v749_v34, %v749_v34 }
 0x145   : > { %v795_v37 = vunpack.c.l.b16 %v756_v35 }
 0x146   : > { %v796_v38 = vunpack.c.l.b16 %v757_v36 }
 0x147   : > { %v808_v39 = vsel %vm807_vm9, %v795_v37, %v806_v32 }
 0x148   : > { %v810_v40 = vsel %vm809_vm10, %v796_v38, %v808_v39 }
 0x149   : > { %v811_v41 = vpack.c.b16 %v810_v40, %v810_v40 }
 0x14b   : > { %1072 = vmatmul.mubr.bf16.vlgmr.msra.gmra.mrb[16].mxu0 %v811_v41 }
 0x21e   : > { %v895_v43 = vpop.f32.mrb[16].mxu0 }
 0x21f   : > { %v896_v21 = vadd.f32 %v1015_v42, %v895_v43  ;;  %v1073_v45 = vpop.f32.mrb[17].mxu0 }
 0x220   : > { %v898_v46 = vpop.f32.mrb[18].mxu0 }
 0x221   : > { %901 = vst [vmem:[%s233_s17] sm:$0xff] %v896_v21  ;;  %v1074_v47 = vpop.f32.mrb[19].mxu0 }
 0x222   : > { %1191 = shalt.err (!%p1188_p7)
}
 0x223   : > { %s1192_s10 = scalar_lea.hbm %s1562_s6, 128  ;;  %s1196_s13 = scalar_lea.hbm %s1609_s5, 256 }
 0x224   : > { %p1193_p8 = scmp.ne.s32.totalorder %s1562_s6, %s1192_s10  ;;  %p1197_p1 = scmp.lt.u32.totalorder %s1562_s6, %s1609_s5 }
 0x225   : > { %p1198_p0 = scmp.lt.u32.totalorder %s1196_s13, %s1192_s10  ;;  %p1200_p6 = scmp.lt.u32.totalorder %s1192_s10, %s1562_s6 }
 0x226   : > { %p1194_p11 = pnand %p1193_p8, %p1652_p9 }
 0x227   : > { %p1199_p5 = por %p1198_p0, %p1197_p1 }
 0x228   : > { %p1195_p13 = pneg %p1194_p11 }
 0x229   : > { %p1201_p10 = por %p1200_p6, %p1199_p5 }
 0x22b   : > { %p1202_p12 = pnand %p1201_p10, %p1195_p13 }
 0x22d   : > { %1205 = shalt.err (!%p1202_p12)
}
 0x22e   : > { %1079 = dma.vmem_to_hbm [thread:$0]  (%p1652_p9), %s1564_s23, 128, %s1562_s6, %s903_s8  }
 0x22f PF: > { %p1091_p2 = scmp.ge.s32.totalorder %s1244_s21, 2  ;;  %s928_s16 = sand.u32 1, %s1232_s18  }
 0x230   : > { %p1653_p3 = scmp.ne.s32.totalorder %s1614_s29, 0  ;;  %s929_s17 = scalar_lea.sflag [#allocation4], %s928_s16 }
 0x232   : > { %p1086_p4 = pnand %p1091_p2, %p1653_p3 }
 0x234   : > { %1227 = dma.done.wait (!%p1086_p4), %s929_s17, 128  }
 0x235   : > { %1229 = vsyncadd (!%p1086_p4), %s929_s17, 4294967168  ;;  %p16_p7 = scmp.ge.s32.totalorder %s1308_s24, 4   ;;  %s1654_s18 = smov %s1236_s19 }
 0x236   : > { %s1655_s19 = smov %s1240_s20  ;;  %s1656_s20 = smov %s1319_s27 }
 0x237   : > { %s1657_s21 = smov %s1308_s24  ;;  %18 = sbr.rel (!%p16_p7) target bundleno = 4 (0x4), region = 80 }
 0x23e   :  { %934 = vsyncpa [#allocation3], 1 }
 0x23f   :  { %936 = vsyncpa [#allocation3 + $0x1], 1 }
 0x240   :  { %937 = vsyncpa [#allocation4], 1 }
 0x241   :  { %939 = vsyncpa [#allocation4 + $0x1], 1 }

</bundles_post_ra>
